<compile_context>
chip_gen: v5e
topology: v5e:2x2
jax: 0.10.0
libtpu: 0.0.40
codegen_flags: <defaults>
</compile_context>

<pallas_src>
import functools

import jax
import jax.numpy as jnp
from jax.experimental import pallas as pl
from jax.experimental.pallas import tpu as pltpu


def _pad_to(n: int, m: int) -> int:
    return ((n + m - 1) // m) * m


def _fused_mlp_kernel(*refs, n_layers: int, out_pads: tuple):
    """Fused MLP: h = x; for each layer: h = relu?(h @ W_i + b_i); o = h.

    refs = (x_ref, w_0..w_{L-1}, b_stack_ref, o_ref)
      x_ref       : (B_pad, K_pad)            f32
      w_i refs    : (in_pad_i, out_pad_i)     f32   (zero-padded)
      b_stack_ref : (n_layers, max_out_pad)   f32   (zero-padded rows)
      o_ref       : (B_pad, out_pad_last)     f32
    """
    x_ref = refs[0]
    w_refs = refs[1:1 + n_layers]
    b_ref = refs[1 + n_layers]
    o_ref = refs[2 + n_layers]

    h = x_ref[...]                                    # (B_pad, K_pad) f32
    for i in range(n_layers):
        n_pad = out_pads[i]
        acc = jnp.dot(h, w_refs[i][...], preferred_element_type=jnp.float32)
        acc = acc + b_ref[i:i + 1, :n_pad]            # (1, n_pad) broadcast over rows
        if i < n_layers - 1:
            acc = jnp.maximum(acc, 0.0)               # ReLU
            # Dropout(0.2): identity in eval mode (no-op)
        h = acc                                       # stays in vregs/VMEM, no layout change
    o_ref[...] = h.astype(o_ref.dtype)


def init_mem_mlp_params(key, input_dims, n_hiddens, n_class, dtype=jnp.float32):
    """Deterministic parameter init. Weight layout is (in, out) per layer
    (the transpose of PyTorch nn.Linear's (out, in))."""
    if isinstance(n_hiddens, int):
        n_hiddens = [n_hiddens]
    dims = [input_dims] + list(n_hiddens) + [n_class]
    params = []
    for i in range(len(dims) - 1):
        fan_in, fan_out = dims[i], dims[i + 1]
        key, kw, kb = jax.random.split(key, 3)
        bound = 1.0 / (fan_in ** 0.5)                 # matches nn.Linear's uniform init range
        w = jax.random.uniform(kw, (fan_in, fan_out), dtype, minval=-bound, maxval=bound)
        b = jax.random.uniform(kb, (1, fan_out), dtype, minval=-bound, maxval=bound)
        params.append((w, b))
    return params


def mem_mlp_forward(x, params):
    """x: (B, C, H, W) NCHW  ->  logits (B, n_class).  Single fused Pallas kernel."""
    B = x.shape[0]
    h = x.reshape(B, -1).astype(jnp.float32)          # == input.view(input.size(0), -1)
    K = h.shape[1]
    n_layers = len(params)

    # --- pad everything to TPU-friendly granules (8 sublanes, 128 lanes) ---
    B_pad = _pad_to(B, 8)
    K_pad = _pad_to(K, 128)
    x_pad = jnp.zeros((B_pad, K_pad), jnp.float32).at[:B, :K].set(h)

    w_pads = []
    out_pads = []
    in_pad = K_pad
    for (w, b) in params:
        fan_in, fan_out = w.shape
        out_pad = _pad_to(fan_out, 128)
        wp = jnp.zeros((in_pad, out_pad), jnp.float32).at[:fan_in, :fan_out].set(w)
        w_pads.append(wp)
        out_pads.append(out_pad)
        in_pad = out_pad                              # next layer consumes padded width

    max_out_pad = max(out_pads)
    b_stack = jnp.zeros((n_layers, max_out_pad), jnp.float32)
    for i, (_, b) in enumerate(params):
        b_stack = b_stack.at[i, :b.shape[-1]].set(b.reshape(-1))

    out_pad_last = out_pads[-1]
    n_class = params[-1][0].shape[1]

    kernel = functools.partial(_fused_mlp_kernel,
                               n_layers=n_layers, out_pads=tuple(out_pads))

    # Single grid point: the whole problem (~35 KB of params + one (8,128)
    # activation tile) fits comfortably in VMEM on v5e/v6e/v7x.
    out = pl.pallas_call(
        kernel,
        out_shape=jax.ShapeDtypeStruct((B_pad, out_pad_last), jnp.float32),
        in_specs=(
            [pl.BlockSpec((B_pad, K_pad), lambda: (0, 0), memory_space=pltpu.VMEM)]
            + [pl.BlockSpec(wp.shape, lambda: (0, 0), memory_space=pltpu.VMEM)
               for wp in w_pads]
            + [pl.BlockSpec((n_layers, max_out_pad), lambda: (0, 0),
                            memory_space=pltpu.VMEM)]
        ),
        out_specs=pl.BlockSpec((B_pad, out_pad_last), lambda: (0, 0),
                               memory_space=pltpu.VMEM),
    )(x_pad, *w_pads, b_stack)

    return out[:B, :n_class]                          # strip batch/lane padding


if __name__ == "__main__":
    key = jax.random.PRNGKey(0)
    k_x, k_p = jax.random.split(key)

    # Small shapes consistent with the module: NCHW input flattened to input_dims.
    B, C, H, W = 2, 4, 8, 8
    input_dims = C * H * W                            # 256
    n_hiddens = [32, 32]
    n_class = 10

    x = jax.random.normal(k_x, (B, C, H, W), dtype=jnp.float32)
    params = init_mem_mlp_params(k_p, input_dims, n_hiddens, n_class)

    out = mem_mlp_forward(x, params)
    out = jax.block_until_ready(out)

    # Sanity check against a plain-JAX reference of the same forward pass.
    ref = x.reshape(B, -1)
    for i, (w, b) in enumerate(params):
        ref = ref @ w + b
        if i < len(params) - 1:
            ref = jnp.maximum(ref, 0.0)
    assert out.shape == (B, n_class)
    assert jnp.allclose(out, ref, atol=1e-4, rtol=1e-4)

    print("KERNEL_OK")
</pallas_src>

<mosaic_0001>
module attributes {stable_mosaic.version = 11 : i64} {
  func.func @_fused_mlp_kernel(%arg0: memref<8x256xf32, #tpu.memory_space<vmem>>, %arg1: memref<256x128xf32, #tpu.memory_space<vmem>>, %arg2: memref<128x128xf32, #tpu.memory_space<vmem>>, %arg3: memref<128x128xf32, #tpu.memory_space<vmem>>, %arg4: memref<3x128xf32, #tpu.memory_space<vmem>>, %arg5: memref<8x128xf32, #tpu.memory_space<vmem>>) attributes {dimension_semantics = [], scalar_prefetch = 0 : i64, scratch_operands = 0 : i64, tpu.core_type = #tpu.core_type<tc>} {
    %c0 = arith.constant 0 : index
    %c0_0 = arith.constant 0 : index
    %0 = vector.load %arg0[%c0, %c0_0] : memref<8x256xf32, #tpu.memory_space<vmem>>, vector<8x256xf32>
    %c0_1 = arith.constant 0 : index
    %c0_2 = arith.constant 0 : index
    %1 = vector.load %arg1[%c0_1, %c0_2] : memref<256x128xf32, #tpu.memory_space<vmem>>, vector<256x128xf32>
    %cst = arith.constant dense<0.000000e+00> : vector<8x128xf32>
    %2 = tpu.matmul %0, %1, %cst {dimension_numbers = #tpu.dot_dimension_numbers<[1], [0], [0], [1], [0, 0, 1, 1], [], []>} : vector<8x256xf32>, vector<256x128xf32>, vector<8x128xf32> -> vector<8x128xf32>
    %c0_3 = arith.constant 0 : index
    %c0_4 = arith.constant 0 : index
    %3 = vector.load %arg4[%c0_3, %c0_4] : memref<3x128xf32, #tpu.memory_space<vmem>>, vector<1x128xf32>
    %4 = vector.broadcast %3 : vector<1x128xf32> to vector<8x128xf32>
    %5 = arith.addf %2, %4 : vector<8x128xf32>
    %cst_5 = arith.constant 0.000000e+00 : f32
    %6 = vector.broadcast %cst_5 : f32 to vector<8x128xf32>
    %7 = arith.maximumf %5, %6 : vector<8x128xf32>
    %c0_6 = arith.constant 0 : index
    %c0_7 = arith.constant 0 : index
    %8 = vector.load %arg2[%c0_6, %c0_7] : memref<128x128xf32, #tpu.memory_space<vmem>>, vector<128x128xf32>
    %cst_8 = arith.constant dense<0.000000e+00> : vector<8x128xf32>
    %9 = tpu.matmul %7, %8, %cst_8 {dimension_numbers = #tpu.dot_dimension_numbers<[1], [0], [0], [1], [0, 0, 1, 1], [], []>} : vector<8x128xf32>, vector<128x128xf32>, vector<8x128xf32> -> vector<8x128xf32>
    %c1 = arith.constant 1 : index
    %c0_9 = arith.constant 0 : index
    %10 = vector.load %arg4[%c1, %c0_9] : memref<3x128xf32, #tpu.memory_space<vmem>>, vector<1x128xf32>
    %11 = vector.broadcast %10 : vector<1x128xf32> to vector<8x128xf32>
    %12 = arith.addf %9, %11 : vector<8x128xf32>
    %cst_10 = arith.constant 0.000000e+00 : f32
    %13 = vector.broadcast %cst_10 : f32 to vector<8x128xf32>
    %14 = arith.maximumf %12, %13 : vector<8x128xf32>
    %c0_11 = arith.constant 0 : index
    %c0_12 = arith.constant 0 : index
    %15 = vector.load %arg3[%c0_11, %c0_12] : memref<128x128xf32, #tpu.memory_space<vmem>>, vector<128x128xf32>
    %cst_13 = arith.constant dense<0.000000e+00> : vector<8x128xf32>
    %16 = tpu.matmul %14, %15, %cst_13 {dimension_numbers = #tpu.dot_dimension_numbers<[1], [0], [0], [1], [0, 0, 1, 1], [], []>} : vector<8x128xf32>, vector<128x128xf32>, vector<8x128xf32> -> vector<8x128xf32>
    %c2 = arith.constant 2 : index
    %c0_14 = arith.constant 0 : index
    %17 = vector.load %arg4[%c2, %c0_14] : memref<3x128xf32, #tpu.memory_space<vmem>>, vector<1x128xf32>
    %18 = vector.broadcast %17 : vector<1x128xf32> to vector<8x128xf32>
    %19 = arith.addf %16, %18 : vector<8x128xf32>
    %c0_15 = arith.constant 0 : index
    %c0_16 = arith.constant 0 : index
    %20 = vector.load %arg5[%c0_15, %c0_16] : memref<8x128xf32, #tpu.memory_space<vmem>>, vector<8x128xf32>
    tpu.vector_store %arg5[%c0_15, %c0_16], %19 {strides = array<i32>} : memref<8x128xf32, #tpu.memory_space<vmem>>, vector<8x128xf32>,
    return
  }
}

</mosaic_0001>

<bundles_post_ra>
// kernel: tpu_custom_call.1
= control target key start
LH: loop header
LB: loop body
LE: loop exit
PB: predicated region body
PF: predicated region fallthrough
CT: control target
= control target key end

     0   :  { %10 = vsyncpa [#allocation3], 0  ;;  %s488_s0 = inlined_call_operand.hbm [shape: f32[8,256], index: 0, kind: input, shape index: {}]   ;;  %s489_s1 = inlined_call_operand.hbm [shape: f32[256,128], index: 1, kind: input, shape index: {}]   ;;  %s490_s2 = inlined_call_operand.hbm [shape: f32[128,128], index: 2, kind: input, shape index: {}]   ;;  %s491_s3 = inlined_call_operand.hbm [shape: f32[128,128], index: 3, kind: input, shape index: {}]   ;;  %s492_s4 = inlined_call_operand.hbm [shape: f32[3,128], index: 4, kind: input, shape index: {}]   ;;  %s493_s5 = inlined_call_operand.hbm [shape: f32[8,128], index: 5, kind: output, shape index: {}]  }
   0x1   :  { %11 = vsyncpa [#allocation6], 0 }
   0x2   :  { %12 = vsyncpa [#allocation9], 0  ;;  %s29_s20 = sshll.u32 %s489_s1, 4  ;;  %s30_s20 = int_to_ptr.hbm [resolvable:$true] %s29_s20 }
   0x3   :  { %13 = vsyncpa [#allocation4], 0  ;;  %s432_s21 = smov [#allocation5]   ;;  %s55_s25 = sshll.u32 %s491_s3, 4  ;;  %s56_s25 = int_to_ptr.hbm [resolvable:$true] %s55_s25 }
   0x4   :  { %s31_s22 = sshll.u32 %s432_s21, 4  ;;  %s433_s26 = smov 128   ;;  %s32_s22 = int_to_ptr.vmem [resolvable:$true] %s31_s22 }
   0x5   :  { %s434_s27 = smov 8   ;;  %s435_s28 = smov [#allocation8]  }
   0x6   :  { %37 = dma.hbm_to_vmem [thread:$0]  %s30_s20, 4096, %s32_s22, [#allocation6], %s433_s26, %s433_s26, %s434_s27  }
   0x7   :  { %s57_s29 = sshll.u32 %s435_s28, 4  ;;  %s19_s7 = sshll.u32 %s488_s0, 4  ;;  %s58_s29 = int_to_ptr.vmem [resolvable:$true] %s57_s29  ;;  %s20_s7 = int_to_ptr.hbm [resolvable:$true] %s19_s7 }
   0x8   :  { %63 = dma.hbm_to_vmem [thread:$0]  %s56_s25, 2048, %s58_s29, [#allocation9], %s433_s26, %s433_s26, %s434_s27  }
   0x9   :  { %s42_s9 = sshll.u32 %s490_s2, 4  ;;  %s436_s10 = smov [#allocation2]   ;;  %s43_s9 = int_to_ptr.hbm [resolvable:$true] %s42_s9 }
   0xa   :  { %s21_s11 = sshll.u32 %s436_s10, 4  ;;  %s437_s3 = smov [#allocation7]   ;;  %s22_s11 = int_to_ptr.vmem [resolvable:$true] %s21_s11 }
   0xb   :  { %24 = dma.hbm_to_vmem [thread:$0]  %s20_s7, 256, %s22_s11, [#allocation3]  }
   0xc   :  { %s44_s12 = sshll.u32 %s437_s3, 4  ;;  %s69_s15 = sshll.u32 %s492_s4, 4  ;;  %s45_s12 = int_to_ptr.vmem [resolvable:$true] %s44_s12  ;;  %s70_s15 = int_to_ptr.hbm [resolvable:$true] %s69_s15 }
   0xd   :  { %50 = dma.hbm_to_vmem [thread:$0]  %s43_s9, 2048, %s45_s12, [#allocation6], %s433_s26, %s433_s26, %s434_s27  }
   0xe   :  { %s438_s0 = smov [#allocation10]  }
   0xf   :  { %s71_s16 = sshll.u32 %s438_s0, 4  ;;  %s72_s16 = int_to_ptr.vmem [resolvable:$true] %s71_s16 }
  0x10   :  { %74 = dma.hbm_to_vmem [thread:$0]  %s70_s15, 64, %s72_s16, [#allocation9]  }
  0x11   :  { %424 = dma.done.wait [#allocation3], 256  }
  0x12   :  { %425 = vsyncadd [#allocation3], 4294967040 }
  0x13   :  { %426 = dma.done.wait [#allocation6], 6144  }
  0x14   :  { %427 = vsyncadd [#allocation6], 4294961152 }
  0x15   :  { %428 = dma.done.wait [#allocation9], 2112  }
  0x16   :  { %429 = vsyncadd [#allocation9], 4294965184  ;;  %v112_v0 = vld [vmem:[#allocation5 + $0x78] sm:$0xff]  ;;  %v111_v1 = vld [vmem:[#allocation5 + $0x70] sm:$0xff]  ;;  %s439_s2 = smov [#allocation11]   ;;  %s257_s19 = sshll.u32 %s493_s5, 4  ;;  %s258_s19 = int_to_ptr.hbm [resolvable:$true] %s257_s19 }
  0x17   :  { %v128_v2 = vld [vmem:[#allocation5 + $0xf8] sm:$0xff]  ;;  %131 = vmatpush.msra.mxu0 %v112_v0  ;;  %v127_v3 = vld [vmem:[#allocation5 + $0xf0] sm:$0xff]  ;;  %v110_v4 = vld [vmem:[#allocation5 + $0x68] sm:$0xff]  ;;  %s255_s4 = sshll.u32 %s439_s2, 4  ;;  %s256_s4 = int_to_ptr.vmem [resolvable:$true] %s255_s4 }
  0x18   :  { %151 = vmatpush.msra.mxu1 %v128_v2  ;;  %v126_v5 = vld [vmem:[#allocation5 + $0xe8] sm:$0xff]  ;;  %v109_v6 = vld [vmem:[#allocation5 + $0x60] sm:$0xff]  ;;  %v108_v8 = vld [vmem:[#allocation5 + $0x58] sm:$0xff] }
  0x19   :  { %132 = vmatpush.msra.mxu0 %v111_v1  ;;  %v125_v7 = vld [vmem:[#allocation5 + $0xe0] sm:$0xff]  ;;  %v124_v9 = vld [vmem:[#allocation5 + $0xd8] sm:$0xff]  ;;  %v107_v10 = vld [vmem:[#allocation5 + $0x50] sm:$0xff] }
  0x1a   :  { %152 = vmatpush.msra.mxu1 %v127_v3  ;;  %v123_v11 = vld [vmem:[#allocation5 + $0xd0] sm:$0xff]  ;;  %v106_v12 = vld [vmem:[#allocation5 + $0x48] sm:$0xff]  ;;  %v187_v14 = vld [vmem:[#allocation7 + $0x78] sm:$0xff] }
  0x1b   :  { %133 = vmatpush.msra.mxu0 %v110_v4  ;;  %v122_v13 = vld [vmem:[#allocation5 + $0xc8] sm:$0xff]  ;;  %v186_v15 = vld [vmem:[#allocation7 + $0x70] sm:$0xff]  ;;  %v105_v16 = vld [vmem:[#allocation5 + $0x40] sm:$0xff]  ;;  %190 = vmatpush.msra.mxu2 %v187_v14 }
  0x1c   :  { %153 = vmatpush.msra.mxu1 %v126_v5  ;;  %v121_v17 = vld [vmem:[#allocation5 + $0xc0] sm:$0xff]  ;;  %v185_v18 = vld [vmem:[#allocation7 + $0x68] sm:$0xff]  ;;  %v104_v19 = vld [vmem:[#allocation5 + $0x38] sm:$0xff] }
  0x1d   :  { %134 = vmatpush.msra.mxu0 %v109_v6  ;;  %v120_v20 = vld [vmem:[#allocation5 + $0xb8] sm:$0xff]  ;;  %191 = vmatpush.msra.mxu2 %v186_v15  ;;  %v103_v21 = vld [vmem:[#allocation5 + $0x30] sm:$0xff]  ;;  %v184_v22 = vld [vmem:[#allocation7 + $0x60] sm:$0xff] }
  0x1e   :  { %154 = vmatpush.msra.mxu1 %v125_v7  ;;  %v119_v23 = vld [vmem:[#allocation5 + $0xb0] sm:$0xff]  ;;  %v183_v24 = vld [vmem:[#allocation7 + $0x58] sm:$0xff]  ;;  %v102_v25 = vld [vmem:[#allocation5 + $0x28] sm:$0xff] }
  0x1f   :  { %135 = vmatpush.msra.mxu0 %v108_v8  ;;  %192 = vmatpush.msra.mxu2 %v185_v18  ;;  %v118_v26 = vld [vmem:[#allocation5 + $0xa8] sm:$0xff]  ;;  %v182_v27 = vld [vmem:[#allocation7 + $0x50] sm:$0xff]  ;;  %v101_v28 = vld [vmem:[#allocation5 + $0x20] sm:$0xff] }
  0x20   :  { %155 = vmatpush.msra.mxu1 %v124_v9  ;;  %v117_v29 = vld [vmem:[#allocation5 + $0xa0] sm:$0xff]  ;;  %v181_v30 = vld [vmem:[#allocation7 + $0x48] sm:$0xff]  ;;  %v100_v31 = vld [vmem:[#allocation5 + $0x18] sm:$0xff] }
  0x21   :  { %136 = vmatpush.msra.mxu0 %v107_v10  ;;  %193 = vmatpush.msra.mxu2 %v184_v22  ;;  %v116_v32 = vld [vmem:[#allocation5 + $0x98] sm:$0xff]  ;;  %v180_v33 = vld [vmem:[#allocation7 + $0x40] sm:$0xff]  ;;  %v99_v34 = vld [vmem:[#allocation5 + $0x10] sm:$0xff] }
  0x22   :  { %156 = vmatpush.msra.mxu1 %v123_v11  ;;  %v115_v35 = vld [vmem:[#allocation5 + $0x90] sm:$0xff]  ;;  %v179_v36 = vld [vmem:[#allocation7 + $0x38] sm:$0xff]  ;;  %v98_v37 = vld [vmem:[#allocation5 + $0x8] sm:$0xff] }
  0x23   :  { %137 = vmatpush.msra.mxu0 %v106_v12  ;;  %194 = vmatpush.msra.mxu2 %v183_v24  ;;  %v114_v38 = vld [vmem:[#allocation5 + $0x88] sm:$0xff]  ;;  %v178_v39 = vld [vmem:[#allocation7 + $0x30] sm:$0xff]  ;;  %v97_v40 = vld [vmem:[#allocation5] sm:$0xff] }
  0x24   :  { %157 = vmatpush.msra.mxu1 %v122_v13  ;;  %v113_v41 = vld [vmem:[#allocation5 + $0x80] sm:$0xff]  ;;  %v95_v42 = vld [vmem:[#allocation2] sm:$0xff]  ;;  %v96_v43 = vld [vmem:[#allocation2 + $0x8] sm:$0xff] }
  0x25   :  { %138 = vmatpush.msra.mxu0 %v105_v16  ;;  %195 = vmatpush.msra.mxu2 %v182_v27  ;;  %v177_v44 = vld [vmem:[#allocation7 + $0x28] sm:$0xff]  ;;  %v176_v45 = vld [vmem:[#allocation7 + $0x20] sm:$0xff]  ;;  %v175_v46 = vld [vmem:[#allocation7 + $0x18] sm:$0xff] }
  0x26   :  { %158 = vmatpush.msra.mxu1 %v121_v17  ;;  %v174_v47 = vld [vmem:[#allocation7 + $0x10] sm:$0xff]  ;;  %v173_v48 = vld [vmem:[#allocation7 + $0x8] sm:$0xff]  ;;  %v172_v49 = vld [vmem:[#allocation7] sm:$0xff] }
  0x27   :  { %139 = vmatpush.msra.mxu0 %v104_v19  ;;  %196 = vmatpush.msra.mxu2 %v181_v30  ;;  %v226_v50 = vld [vmem:[#allocation8 + $0x78] sm:$0xff]  ;;  %v225_v51 = vld [vmem:[#allocation8 + $0x70] sm:$0xff]  ;;  %v224_v52 = vld [vmem:[#allocation8 + $0x68] sm:$0xff] }
  0x28   :  { %159 = vmatpush.msra.mxu1 %v120_v20  ;;  %229 = vmatpush.msra.mxu3 %v226_v50  ;;  %v223_v53 = vld [vmem:[#allocation8 + $0x60] sm:$0xff]  ;;  %v222_v54 = vld [vmem:[#allocation8 + $0x58] sm:$0xff]  ;;  %v221_v55 = vld [vmem:[#allocation8 + $0x50] sm:$0xff] }
  0x29   :  { %140 = vmatpush.msra.mxu0 %v103_v21  ;;  %197 = vmatpush.msra.mxu2 %v180_v33  ;;  %v220_v56 = vld [vmem:[#allocation8 + $0x48] sm:$0xff]  ;;  %v219_v57 = vld [vmem:[#allocation8 + $0x40] sm:$0xff]  ;;  %v218_v58 = vld [vmem:[#allocation8 + $0x38] sm:$0xff] }
  0x2a   :  { %160 = vmatpush.msra.mxu1 %v119_v23  ;;  %230 = vmatpush.msra.mxu3 %v225_v51  ;;  %v217_v59 = vld [vmem:[#allocation8 + $0x30] sm:$0xff]  ;;  %v216_v60 = vld [vmem:[#allocation8 + $0x28] sm:$0xff]  ;;  %v215_v61 = vld [vmem:[#allocation8 + $0x20] sm:$0xff] }
  0x2b   :  { %141 = vmatpush.msra.mxu0 %v102_v25  ;;  %198 = vmatpush.msra.mxu2 %v179_v36  ;;  %v277_v62 = vld [vmem:[#allocation10] ss:$0 sm:$0xff]  ;;  %v214_v63 = vld [vmem:[#allocation8 + $0x18] sm:$0xff]  ;;  %v213_v5 = vld [vmem:[#allocation8 + $0x10] sm:$0xff] }
  0x2c   :  { %161 = vmatpush.msra.mxu1 %v118_v26  ;;  %231 = vmatpush.msra.mxu3 %v224_v52  ;;  %v212_v6 = vld [vmem:[#allocation8 + $0x8] sm:$0xff]  ;;  %v211_v7 = vld [vmem:[#allocation8] sm:$0xff] }
  0x2d   :  { %142 = vmatpush.msra.mxu0 %v101_v28  ;;  %199 = vmatpush.msra.mxu2 %v178_v39  ;;  %v278_v8 = vld [vmem:[#allocation10 + $0x1] ss:$0 sm:$0xff]  ;;  %v279_v12 = vld [vmem:[#allocation10 + $0x2] ss:$0 sm:$0xff] }
  0x2e   :  { %162 = vmatpush.msra.mxu1 %v117_v29  ;;  %232 = vmatpush.msra.mxu3 %v223_v53 }
  0x2f   :  { %143 = vmatpush.msra.mxu0 %v100_v31  ;;  %200 = vmatpush.msra.mxu2 %v177_v44 }
  0x30   :  { %163 = vmatpush.msra.mxu1 %v116_v32  ;;  %233 = vmatpush.msra.mxu3 %v222_v54 }
  0x31   :  { %144 = vmatpush.msra.mxu0 %v99_v34  ;;  %201 = vmatpush.msra.mxu2 %v176_v45 }
  0x32   :  { %164 = vmatpush.msra.mxu1 %v115_v35  ;;  %234 = vmatpush.msra.mxu3 %v221_v55 }
  0x33   :  { %145 = vmatpush.msra.mxu0 %v98_v37  ;;  %202 = vmatpush.msra.mxu2 %v175_v46 }
  0x34   :  { %165 = vmatpush.msra.mxu1 %v114_v38  ;;  %235 = vmatpush.msra.mxu3 %v220_v56 }
  0x35   :  { %146 = vmatpush.msra.mxu0 %v97_v40  ;;  %203 = vmatpush.msra.mxu2 %v174_v47 }
  0x36   :  { %166 = vmatpush.msra.mxu1 %v113_v41  ;;  %147 = vmatmul.f32.vlgmr.msra.gmra.mxu0 %v95_v42 }
  0x37   :  { %167 = vmatmul.f32.vlgmr.msra.gmra.mxu1 %v96_v43  ;;  %204 = vmatpush.msra.mxu2 %v173_v48 }
  0x38   :  { %236 = vmatpush.msra.mxu3 %v219_v57 }
  0x39   :  { %205 = vmatpush.msra.mxu2 %v172_v49 }
  0x3a   :  { %237 = vmatpush.msra.mxu3 %v218_v58 }
  0x3c   :  { %238 = vmatpush.msra.mxu3 %v217_v59 }
  0x3e   :  { %239 = vmatpush.msra.mxu3 %v216_v60 }
  0x40   :  { %240 = vmatpush.msra.mxu3 %v215_v61 }
  0x42   :  { %241 = vmatpush.msra.mxu3 %v214_v63 }
  0x44   :  { %242 = vmatpush.msra.mxu3 %v213_v5 }
  0x46   :  { %243 = vmatpush.msra.mxu3 %v212_v6 }
  0x48   :  { %244 = vmatpush.msra.mxu3 %v211_v7 }
  0xb3   :  { %v148_v0 = vpop.f32.mrf.mxu0 }
  0xb4   :  { %v168_v1 = vpop.f32.mrf.mxu1  ;;  %v149_v2 = vadd.f32 %v277_v62, %v148_v0 }
  0xb6   :  { %v169_v3 = vadd.f32 %v168_v1, %v149_v2 }
  0xb8   :  { %v171_v4 = vmax.f32 %v169_v3, 0.0 }
  0xba   :  { %206 = vmatmul.f32.vlgmr.msra.gmra.mxu2 %v171_v4 }
 0x13d   :  { %v207_v9 = vpop.f32.mrf.mxu2 }
 0x13e   :  { %v208_v10 = vadd.f32 %v278_v8, %v207_v9 }
 0x140   :  { %v210_v11 = vmax.f32 %v208_v10, 0.0 }
 0x142   :  { %245 = vmatmul.f32.vlgmr.msra.gmra.mxu3 %v210_v11 }
 0x1c5   :  { %v246_v13 = vpop.f32.mrf.mxu3 }
 0x1c6   :  { %v247_v14 = vadd.f32 %v279_v12, %v246_v13 }
 0x1c8   :  { %249 = vst [vmem:[#allocation11] sm:$0xff] %v247_v14 }
 0x1c9   :  { %260 = dma.vmem_to_hbm [thread:$0]  %s256_s4, 128, %s258_s19, [#allocation4]  }
 0x1ca   :  { %430 = dma.done.wait [#allocation4], 128  }
 0x1cb   :  { %431 = vsyncadd [#allocation4], 4294967168 }
 0x1cc   :  { %265 = vsyncpa [#allocation3], 1 }
 0x1cd   :  { %266 = vsyncpa [#allocation6], 1 }
 0x1ce   :  { %267 = vsyncpa [#allocation9], 1 }
 0x1cf   :  { %268 = vsyncpa [#allocation4], 1 }

</bundles_post_ra>
